<compile_context>
chip_gen: v7x
topology: tpu7x:2x2x1
jax: 0.10.0
libtpu: 0.0.40
codegen_flags: <defaults>
</compile_context>

<pallas_src>
import functools

import jax
import jax.numpy as jnp
from jax.experimental import pallas as pl
from jax.experimental.pallas import tpu as pltpu

_LANE = 128


def _round_up(n, m):
    return ((n + m - 1) // m) * m


def _mlp_kernel(x_ref,
                w1_ref, b1_ref,
                w2_ref, b2_ref,
                w3_ref, b3_ref,
                w4_ref, b4_ref,
                o_ref):
    """One batch tile of: (Linear -> ReLU) x3 -> Linear(H, 2)."""
    cdt = w1_ref.dtype  # MXU operand dtype (f32 or bf16)

    def hidden_layer(h, w_ref, b_ref):
        # f32 accumulation on the MXU; bias-add + ReLU in f32 on the VPU.
        z = jnp.dot(h, w_ref[...], preferred_element_type=jnp.float32)
        z = z + b_ref[...]
        return jnp.maximum(z, 0.0).astype(cdt)

    h = x_ref[...].astype(cdt)
    h = hidden_layer(h, w1_ref, b1_ref)
    h = hidden_layer(h, w2_ref, b2_ref)
    h = hidden_layer(h, w3_ref, b3_ref)
    out = (jnp.dot(h, w4_ref[...], preferred_element_type=jnp.float32)
           + b4_ref[...])
    o_ref[...] = out.astype(o_ref.dtype)


def prepare_params(params, compute_dtype=jnp.float32):
    """One-time weight prep (call OUTSIDE the jitted forward).

    * Hidden dim padded to a multiple of 128 lanes (exact under ReLU: the padded
      rows/cols of W and entries of b are zero, so padded activations stay zero).
    * W1's rows (x_in) and W4's columns (2 classes) are left unpadded so the
      kernel's input read and logit writeback stay small.
    * Weights cast to the MXU operand dtype; biases kept in f32.
    """
    cdt = jnp.dtype(compute_dtype)
    w1, b1 = params["w1"], params["b1"]
    w2, b2 = params["w2"], params["b2"]
    w3, b3 = params["w3"], params["b3"]
    w4, b4 = params["w4"], params["b4"]
    x_in, H = w1.shape
    n_out = w4.shape[1]
    Hp = _round_up(H, _LANE)

    def pad(a, rows, cols, dt):
        return jnp.pad(a, ((0, rows - a.shape[0]),
                           (0, cols - a.shape[1]))).astype(dt)

    return dict(
        w1=pad(w1, x_in, Hp, cdt),  b1=pad(b1, 1, Hp, jnp.float32),
        w2=pad(w2, Hp, Hp, cdt),    b2=pad(b2, 1, Hp, jnp.float32),
        w3=pad(w3, Hp, Hp, cdt),    b3=pad(b3, 1, Hp, jnp.float32),
        w4=pad(w4, Hp, n_out, cdt), b4=pad(b4, 1, n_out, jnp.float32),
    )


@functools.partial(jax.jit, static_argnames=("tb",))
def classifier_c2st2(x, prepared, *, tb=1024):
    """Pallas forward pass of classifierC2ST2.

    x:        (N, x_in) float32 (feature dim left unpadded)
    prepared: output of prepare_params() (weights (in, out), biases (1, out))
    """
    w1, b1 = prepared["w1"], prepared["b1"]
    w2, b2 = prepared["w2"], prepared["b2"]
    w3, b3 = prepared["w3"], prepared["b3"]
    w4, b4 = prepared["w4"], prepared["b4"]

    N, x_in = x.shape
    n_out = w4.shape[1]
    cdt = jnp.dtype(w1.dtype)

    # Sublane packing: 8 rows per vreg tile for f32, 16 for bf16.
    sub = 8 * (4 // cdt.itemsize)

    # One large batch tile; per-step VMEM is tiny (x tile is tb * x_in * 4 B),
    # so prefer the largest tile that covers N (amortizes ~0.35us/step overhead).
    tb_eff = min(_round_up(tb, sub), _round_up(N, sub))
    grid = pl.cdiv(N, tb_eff)

    # v7x megacore: the parallel grid axis is sharded across 2 TensorCores, so
    # prefer an even step count when there is more than one step. Costs at most
    # one extra ~0.35us step on 1-TC chips.
    if grid > 1 and grid % 2 == 1:
        tb_even = _round_up(pl.cdiv(N, grid + 1), sub)
        if pl.cdiv(N, tb_even) % 2 == 0:
            tb_eff = tb_even
            grid = pl.cdiv(N, tb_eff)

    # Whole-array, single-buffered VMEM residents for the constant-index operands.
    resident = pl.BlockSpec(memory_space=pltpu.MemorySpace.VMEM)

    return pl.pallas_call(
        _mlp_kernel,
        out_shape=jax.ShapeDtypeStruct((N, n_out), jnp.float32),
        grid=(grid,),
        in_specs=[
            pl.BlockSpec((tb_eff, x_in), lambda i: (i, 0)),  # x: batch-tiled, unpadded features
            resident, resident,                              # layer 1
            resident, resident,                              # layer 2
            resident, resident,                              # layer 3
            resident, resident,                              # layer 4
        ],
        out_specs=pl.BlockSpec((tb_eff, n_out), lambda i: (i, 0)),
        compiler_params=pltpu.CompilerParams(
            dimension_semantics=("parallel",)),
    )(x, w1, b1, w2, b2, w3, b3, w4, b4)


def init_params(key, x_in, H, num_classes=2, dtype=jnp.float32):
    """Deterministic synthetic init (uniform, like PyTorch's default scale)."""
    ks = jax.random.split(key, 8)

    def lin(kw, kb, fan_in, fan_out):
        bound = 1.0 / (fan_in ** 0.5)
        w = jax.random.uniform(kw, (fan_in, fan_out), dtype, -bound, bound)
        b = jax.random.uniform(kb, (1, fan_out), dtype, -bound, bound)
        return w, b

    w1, b1 = lin(ks[0], ks[1], x_in, H)
    w2, b2 = lin(ks[2], ks[3], H, H)
    w3, b3 = lin(ks[4], ks[5], H, H)
    w4, b4 = lin(ks[6], ks[7], H, num_classes)
    return dict(w1=w1, b1=b1, w2=w2, b2=b2, w3=w3, b3=b3, w4=w4, b4=b4)


def reference(x, p):
    """Pure-JAX reference of the PyTorch forward (ReLU x3, linear head)."""
    h = jnp.maximum(x @ p["w1"] + p["b1"], 0.0)
    h = jnp.maximum(h @ p["w2"] + p["b2"], 0.0)
    h = jnp.maximum(h @ p["w3"] + p["b3"], 0.0)
    return h @ p["w4"] + p["b4"]


if __name__ == "__main__":
    # Small shapes consistent with classifierC2ST2(x_in, H, x_out); fc4 -> 2 classes.
    N, x_in, H, x_out = 64, 16, 32, 16   # x_out is unused by the module's head
    key = jax.random.PRNGKey(0)
    kx, kp = jax.random.split(key)

    x = jax.random.normal(kx, (N, x_in), jnp.float32)
    params = init_params(kp, x_in, H, num_classes=2)
    ref = reference(x, params)

    # ---- default f32 path: exact (up to f32 rounding) vs the reference ----
    prep_f32 = prepare_params(params, jnp.float32)
    out = jax.block_until_ready(classifier_c2st2(x, prep_f32))
    assert out.shape == (N, 2), out.shape
    assert jnp.allclose(out, ref, atol=1e-4, rtol=1e-4), "f32 mismatch vs reference"

    # ---- bf16 MXU-operand path (f32 accumulation): loose tolerance check ----
    prep_bf16 = prepare_params(params, jnp.bfloat16)
    out_bf16 = jax.block_until_ready(classifier_c2st2(x, prep_bf16))
    assert out_bf16.shape == (N, 2), out_bf16.shape
    assert jnp.all(jnp.isfinite(out_bf16))
    assert jnp.allclose(out_bf16, ref, atol=1e-1, rtol=1e-1), "bf16 mismatch vs reference"

    print("KERNEL_OK")
</pallas_src>

<mosaic_0001>
module attributes {stable_mosaic.version = 11 : i64} {
  func.func @_mlp_kernel(%arg0: i32, %arg1: memref<64x16xf32, #tpu.memory_space<vmem>>, %arg2: memref<16x128xf32, #tpu.memory_space<vmem>>, %arg3: memref<1x128xf32, #tpu.memory_space<vmem>>, %arg4: memref<128x128xf32, #tpu.memory_space<vmem>>, %arg5: memref<1x128xf32, #tpu.memory_space<vmem>>, %arg6: memref<128x128xf32, #tpu.memory_space<vmem>>, %arg7: memref<1x128xf32, #tpu.memory_space<vmem>>, %arg8: memref<128x2xf32, #tpu.memory_space<vmem>>, %arg9: memref<1x2xf32, #tpu.memory_space<vmem>>, %arg10: memref<64x2xf32, #tpu.memory_space<vmem>>) attributes {dimension_semantics = [#tpu.dimension_semantics<parallel>], iteration_bounds = array<i64: 1>, scalar_prefetch = 0 : i64, scratch_operands = 0 : i64, tpu.core_type = #tpu.core_type<tc>, window_params = [{transform_indices = @transform_0, window_bounds = array<i64: 64, 16>}, {pipeline_mode = #tpu.pipeline_mode<synchronous>, transform_indices = @transform_1, window_bounds = array<i64: 16, 128>}, {pipeline_mode = #tpu.pipeline_mode<synchronous>, transform_indices = @transform_2, window_bounds = array<i64: 1, 128>}, {pipeline_mode = #tpu.pipeline_mode<synchronous>, transform_indices = @transform_3, window_bounds = array<i64: 128, 128>}, {pipeline_mode = #tpu.pipeline_mode<synchronous>, transform_indices = @transform_4, window_bounds = array<i64: 1, 128>}, {pipeline_mode = #tpu.pipeline_mode<synchronous>, transform_indices = @transform_5, window_bounds = array<i64: 128, 128>}, {pipeline_mode = #tpu.pipeline_mode<synchronous>, transform_indices = @transform_6, window_bounds = array<i64: 1, 128>}, {pipeline_mode = #tpu.pipeline_mode<synchronous>, transform_indices = @transform_7, window_bounds = array<i64: 128, 2>}, {pipeline_mode = #tpu.pipeline_mode<synchronous>, transform_indices = @transform_8, window_bounds = array<i64: 1, 2>}, {transform_indices = @transform_9, window_bounds = array<i64: 64, 2>}]} {
    %c0 = arith.constant 0 : index
    %c0_0 = arith.constant 0 : index
    %0 = vector.load %arg1[%c0, %c0_0] : memref<64x16xf32, #tpu.memory_space<vmem>>, vector<64x16xf32>
    %c0_1 = arith.constant 0 : index
    %c0_2 = arith.constant 0 : index
    %1 = vector.load %arg2[%c0_1, %c0_2] : memref<16x128xf32, #tpu.memory_space<vmem>>, vector<16x128xf32>
    %cst = arith.constant dense<0.000000e+00> : vector<64x128xf32>
    %2 = tpu.matmul %0, %1, %cst {dimension_numbers = #tpu.dot_dimension_numbers<[1], [0], [0], [1], [0, 0, 1, 1], [], []>} : vector<64x16xf32>, vector<16x128xf32>, vector<64x128xf32> -> vector<64x128xf32>
    %c0_3 = arith.constant 0 : index
    %c0_4 = arith.constant 0 : index
    %3 = vector.load %arg3[%c0_3, %c0_4] : memref<1x128xf32, #tpu.memory_space<vmem>>, vector<1x128xf32>
    %4 = vector.broadcast %3 : vector<1x128xf32> to vector<64x128xf32>
    %5 = arith.addf %2, %4 : vector<64x128xf32>
    %cst_5 = arith.constant 0.000000e+00 : f32
    %6 = vector.broadcast %cst_5 : f32 to vector<64x128xf32>
    %7 = arith.maximumf %5, %6 : vector<64x128xf32>
    %c0_6 = arith.constant 0 : index
    %c0_7 = arith.constant 0 : index
    %8 = vector.load %arg4[%c0_6, %c0_7] : memref<128x128xf32, #tpu.memory_space<vmem>>, vector<128x128xf32>
    %cst_8 = arith.constant dense<0.000000e+00> : vector<64x128xf32>
    %9 = tpu.matmul %7, %8, %cst_8 {dimension_numbers = #tpu.dot_dimension_numbers<[1], [0], [0], [1], [0, 0, 1, 1], [], []>} : vector<64x128xf32>, vector<128x128xf32>, vector<64x128xf32> -> vector<64x128xf32>
    %c0_9 = arith.constant 0 : index
    %c0_10 = arith.constant 0 : index
    %10 = vector.load %arg5[%c0_9, %c0_10] : memref<1x128xf32, #tpu.memory_space<vmem>>, vector<1x128xf32>
    %11 = vector.broadcast %10 : vector<1x128xf32> to vector<64x128xf32>
    %12 = arith.addf %9, %11 : vector<64x128xf32>
    %cst_11 = arith.constant 0.000000e+00 : f32
    %13 = vector.broadcast %cst_11 : f32 to vector<64x128xf32>
    %14 = arith.maximumf %12, %13 : vector<64x128xf32>
    %c0_12 = arith.constant 0 : index
    %c0_13 = arith.constant 0 : index
    %15 = vector.load %arg6[%c0_12, %c0_13] : memref<128x128xf32, #tpu.memory_space<vmem>>, vector<128x128xf32>
    %cst_14 = arith.constant dense<0.000000e+00> : vector<64x128xf32>
    %16 = tpu.matmul %14, %15, %cst_14 {dimension_numbers = #tpu.dot_dimension_numbers<[1], [0], [0], [1], [0, 0, 1, 1], [], []>} : vector<64x128xf32>, vector<128x128xf32>, vector<64x128xf32> -> vector<64x128xf32>
    %c0_15 = arith.constant 0 : index
    %c0_16 = arith.constant 0 : index
    %17 = vector.load %arg7[%c0_15, %c0_16] : memref<1x128xf32, #tpu.memory_space<vmem>>, vector<1x128xf32>
    %18 = vector.broadcast %17 : vector<1x128xf32> to vector<64x128xf32>
    %19 = arith.addf %16, %18 : vector<64x128xf32>
    %cst_17 = arith.constant 0.000000e+00 : f32
    %20 = vector.broadcast %cst_17 : f32 to vector<64x128xf32>
    %21 = arith.maximumf %19, %20 : vector<64x128xf32>
    %c0_18 = arith.constant 0 : index
    %c0_19 = arith.constant 0 : index
    %22 = vector.load %arg8[%c0_18, %c0_19] : memref<128x2xf32, #tpu.memory_space<vmem>>, vector<128x2xf32>
    %cst_20 = arith.constant dense<0.000000e+00> : vector<64x2xf32>
    %23 = tpu.matmul %21, %22, %cst_20 {dimension_numbers = #tpu.dot_dimension_numbers<[1], [0], [0], [1], [0, 0, 1, 1], [], []>} : vector<64x128xf32>, vector<128x2xf32>, vector<64x2xf32> -> vector<64x2xf32>
    %c0_21 = arith.constant 0 : index
    %c0_22 = arith.constant 0 : index
    %24 = vector.load %arg9[%c0_21, %c0_22] : memref<1x2xf32, #tpu.memory_space<vmem>>, vector<1x2xf32>
    %25 = vector.broadcast %24 : vector<1x2xf32> to vector<64x2xf32>
    %26 = arith.addf %23, %25 : vector<64x2xf32>
    %c0_23 = arith.constant 0 : index
    %c0_24 = arith.constant 0 : index
    %27 = vector.load %arg10[%c0_23, %c0_24] : memref<64x2xf32, #tpu.memory_space<vmem>>, vector<64x2xf32>
    tpu.vector_store %arg10[%c0_23, %c0_24], %26 {strides = array<i32>} : memref<64x2xf32, #tpu.memory_space<vmem>>, vector<64x2xf32>,
    return
  }
  func.func @transform_0(%arg0: i32) -> (i32, i32) {
    %c0_i32 = arith.constant 0 : i32
    %c0_i32_0 = arith.constant 0 : i32
    return %arg0, %c0_i32 : i32, i32
  }
  func.func @transform_1(%arg0: i32) -> (i32, i32) {
    %c0_i32 = arith.constant 0 : i32
    %c0_i32_0 = arith.constant 0 : i32
    %c0_i32_1 = arith.constant 0 : i32
    return %c0_i32, %c0_i32_0 : i32, i32
  }
  func.func @transform_2(%arg0: i32) -> (i32, i32) {
    %c0_i32 = arith.constant 0 : i32
    %c0_i32_0 = arith.constant 0 : i32
    %c0_i32_1 = arith.constant 0 : i32
    return %c0_i32, %c0_i32_0 : i32, i32
  }
  func.func @transform_3(%arg0: i32) -> (i32, i32) {
    %c0_i32 = arith.constant 0 : i32
    %c0_i32_0 = arith.constant 0 : i32
    %c0_i32_1 = arith.constant 0 : i32
    return %c0_i32, %c0_i32_0 : i32, i32
  }
  func.func @transform_4(%arg0: i32) -> (i32, i32) {
    %c0_i32 = arith.constant 0 : i32
    %c0_i32_0 = arith.constant 0 : i32
    %c0_i32_1 = arith.constant 0 : i32
    return %c0_i32, %c0_i32_0 : i32, i32
  }
  func.func @transform_5(%arg0: i32) -> (i32, i32) {
    %c0_i32 = arith.constant 0 : i32
    %c0_i32_0 = arith.constant 0 : i32
    %c0_i32_1 = arith.constant 0 : i32
    return %c0_i32, %c0_i32_0 : i32, i32
  }
  func.func @transform_6(%arg0: i32) -> (i32, i32) {
    %c0_i32 = arith.constant 0 : i32
    %c0_i32_0 = arith.constant 0 : i32
    %c0_i32_1 = arith.constant 0 : i32
    return %c0_i32, %c0_i32_0 : i32, i32
  }
  func.func @transform_7(%arg0: i32) -> (i32, i32) {
    %c0_i32 = arith.constant 0 : i32
    %c0_i32_0 = arith.constant 0 : i32
    %c0_i32_1 = arith.constant 0 : i32
    return %c0_i32, %c0_i32_0 : i32, i32
  }
  func.func @transform_8(%arg0: i32) -> (i32, i32) {
    %c0_i32 = arith.constant 0 : i32
    %c0_i32_0 = arith.constant 0 : i32
    %c0_i32_1 = arith.constant 0 : i32
    return %c0_i32, %c0_i32_0 : i32, i32
  }
  func.func @transform_9(%arg0: i32) -> (i32, i32) {
    %c0_i32 = arith.constant 0 : i32
    %c0_i32_0 = arith.constant 0 : i32
    return %arg0, %c0_i32 : i32, i32
  }
}

</mosaic_0001>

<bundles_post_ra>
// kernel: classifier_c2st2.1
= control target key start
LH: loop header
LB: loop body
LE: loop exit
PB: predicated region body
PF: predicated region fallthrough
CT: control target
= control target key end

     0   :  { %14 = vsyncpa [#allocation3], 0  ;;  %s1000_s30 = smov [#allocation2]   ;;  %s1243_s0 = inlined_call_operand.vmem [shape: f32[64,16], index: 0, kind: input, shape index: {}]   ;;  %s1244_s1 = inlined_call_operand.vmem [shape: f32[16,128], index: 1, kind: input, shape index: {}]   ;;  %s1245_s2 = inlined_call_operand.vmem [shape: f32[1,128], index: 2, kind: input, shape index: {}]   ;;  %s1246_s3 = inlined_call_operand.vmem [shape: f32[128,128], index: 3, kind: input, shape index: {}]   ;;  %s1247_s4 = inlined_call_operand.vmem [shape: f32[1,128], index: 4, kind: input, shape index: {}]   ;;  %s1248_s5 = inlined_call_operand.hbm [shape: f32[128,128], index: 5, kind: input, shape index: {}]   ;;  %s1249_s6 = inlined_call_operand.vmem [shape: f32[1,128], index: 6, kind: input, shape index: {}]   ;;  %s1250_s7 = inlined_call_operand.vmem [shape: f32[128,2], index: 7, kind: input, shape index: {}]   ;;  %s1251_s8 = inlined_call_operand.vmem [shape: f32[1,2], index: 8, kind: input, shape index: {}]   ;;  %s1252_s9 = inlined_call_operand.vmem [shape: f32[64,2], index: 9, kind: output, shape index: {}]  }
   0x1   :  { %s30_s10 = sshll.u32 %s1000_s30, 4  ;;  %s976_s13 = scalar_lea.hbm %s1248_s5, 2048  ;;  %s31_s10 = int_to_ptr.vmem [resolvable:$true] %s30_s10 }
   0x2   :  { %p977_p0 = scmp.ne.s32.totalorder %s1248_s5, %s976_s13  ;;  %p980_p1 = scmp.lt.u32.totalorder %s976_s13, %s1248_s5 }
   0x4   :  { %p982_p2 = pnand %p980_p1, %p977_p0 }
   0x6   :  { %985 = shalt.err (!%p982_p2)
}
   0x7   :  { %s986_s18 = scalar_lea.vmem %s31_s10, 2048  ;;  %p991_p4 = scmp.lt.s32.totalorder %s31_s10, %s31_s10 }
   0x8   :  { %p987_p3 = scmp.ne.s32.totalorder %s31_s10, %s986_s18  ;;  %p992_p5 = scmp.lt.s32.totalorder %s986_s18, %s986_s18 }
   0xa   :  { %p993_p6 = por %p992_p5, %p991_p4 }
   0xc   :  { %p994_p7 = pnand %p993_p6, %p987_p3 }
   0xe   :  { %997 = shalt.err (!%p994_p7)
}
   0xf   :  { %s1001_s19 = smov 128   ;;  %s1002_s20 = smov 8  }
  0x10   :  { %36 = dma.hbm_to_vmem [thread:$0]  %s1248_s5, 2048, %s31_s10, [#allocation3], %s1001_s19, %s1001_s19, %s1002_s20  }
  0x11   :  { %998 = dma.done.wait [#allocation3], 2048  }
  0x12   :  { %999 = vsyncadd [#allocation3], 4294965248  ;;  %vm63_vm0 = vcmask 130048   ;;  %v54_v0 = vld [vmem:[%s1244_s1] sm:$0xff]  ;;  %v55_v1 = vld [vmem:[%s1244_s1 + $0x8] sm:$0xff]  ;;  %vm601_vm1 = vcmask 15360  }
  0x13   :  { %v46_v2 = vld [vmem:[%s1243_s0] sm:$0xff]  ;;  %v857_v3 = vpack.c.bf16 %v55_v1, %v54_v0  ;;  %v202_v5 = vld [vmem:[%s1246_s3 + $0x8] sm:$0xff]  ;;  %v203_v8 = vld [vmem:[%s1246_s3 + $0x10] sm:$0xff] }
  0x14   :  { %713 = vmatprep.mubr.msk.f32.mxu0 %vm63_vm0, %v46_v2  ;;  %v201_v4 = vld [vmem:[%s1246_s3] sm:$0xff]  ;;  %v47_v6 = vld [vmem:[%s1243_s0 + $0x8] sm:$0xff]  ;;  %v204_v9 = vld [vmem:[%s1246_s3 + $0x18] sm:$0xff] }
  0x15   :  { %858 = vmatprep.subr.bf16.mxu0 %v857_v3  ;;  %v861_v7 = vpack.c.bf16 %v202_v5, %v201_v4  ;;  %v48_v10 = vld [vmem:[%s1243_s0 + $0x10] sm:$0xff]  ;;  %v865_v11 = vpack.c.bf16 %v204_v9, %v203_v8  ;;  %v205_v12 = vld [vmem:[%s1246_s3 + $0x20] sm:$0xff]  ;;  %v206_v13 = vld [vmem:[%s1246_s3 + $0x28] sm:$0xff] }
  0x16   :  { %860 = vmatpush3.bf16.msra.mxu0 %v857_v3  ;;  %v49_v14 = vld [vmem:[%s1243_s0 + $0x18] sm:$0xff]  ;;  %v869_v15 = vpack.c.bf16 %v206_v13, %v205_v12  ;;  %v50_v16 = vld [vmem:[%s1243_s0 + $0x20] sm:$0xff]  ;;  %v207_v17 = vld [vmem:[%s1246_s3 + $0x30] sm:$0xff] }
  0x17   :  { %862 = vmatprep.subr.bf16.mxu1 %v861_v7  ;;  %v208_v18 = vld [vmem:[%s1246_s3 + $0x38] sm:$0xff]  ;;  %v51_v19 = vld [vmem:[%s1243_s0 + $0x28] sm:$0xff]  ;;  %v52_v21 = vld [vmem:[%s1243_s0 + $0x30] sm:$0xff] }
  0x18   :  { %864 = vmatpush3.bf16.msra.mxu1 %v861_v7  ;;  %v873_v20 = vpack.c.bf16 %v208_v18, %v207_v17  ;;  %v209_v22 = vld [vmem:[%s1246_s3 + $0x40] sm:$0xff]  ;;  %v210_v23 = vld [vmem:[%s1246_s3 + $0x48] sm:$0xff]  ;;  %v53_v24 = vld [vmem:[%s1243_s0 + $0x38] sm:$0xff] }
  0x19   :  { %714 = vmatmul.mubr.msk.f32.vlgmr.msra.gmra.mrb[0].mxu0 %vm63_vm0, %v47_v6  ;;  %866 = vmatprep.subr.bf16.mxu1 %v865_v11  ;;  %v877_v25 = vpack.c.bf16 %v210_v23, %v209_v22  ;;  %v211_v26 = vld [vmem:[%s1246_s3 + $0x50] sm:$0xff]  ;;  %v212_v27 = vld [vmem:[%s1246_s3 + $0x58] sm:$0xff]  ;;  %v213_v29 = vld [vmem:[%s1246_s3 + $0x60] sm:$0xff] }
  0x1a   :  { %716 = vmatprep.mubr.msk.f32.mxu0 %vm63_vm0, %v48_v10  ;;  %v881_v28 = vpack.c.bf16 %v212_v27, %v211_v26  ;;  %v214_v30 = vld [vmem:[%s1246_s3 + $0x68] sm:$0xff]  ;;  %v215_v32 = vld [vmem:[%s1246_s3 + $0x70] sm:$0xff]  ;;  %v216_v33 = vld [vmem:[%s1246_s3 + $0x78] sm:$0xff] }
  0x1b   :  { %v885_v31 = vpack.c.bf16 %v214_v30, %v213_v29  ;;  %v889_v34 = vpack.c.bf16 %v216_v33, %v215_v32  ;;  %v337_v35 = vld [vmem:[#allocation2] sm:$0xff]  ;;  %v338_v36 = vld [vmem:[#allocation2 + $0x8] sm:$0xff]  ;;  %v339_v37 = vld [vmem:[#allocation2 + $0x10] sm:$0xff] }
  0x1c   :  { %868 = vmatpush3.bf16.msra.mxu1 %v865_v11  ;;  %v893_v38 = vpack.c.bf16 %v338_v36, %v337_v35  ;;  %v340_v39 = vld [vmem:[#allocation2 + $0x18] sm:$0xff]  ;;  %v341_v41 = vld [vmem:[#allocation2 + $0x20] sm:$0xff]  ;;  %v342_v42 = vld [vmem:[#allocation2 + $0x28] sm:$0xff] }
  0x1d   :  { %717 = vmatmul.mubr.msk.f32.gmra.mrb[2].mxu0 %vm63_vm0, %v49_v14  ;;  %870 = vmatprep.subr.bf16.mxu1 %v869_v15  ;;  %v897_v40 = vpack.c.bf16 %v340_v39, %v339_v37  ;;  %v901_v43 = vpack.c.bf16 %v342_v42, %v341_v41  ;;  %v343_v44 = vld [vmem:[#allocation2 + $0x30] sm:$0xff]  ;;  %v344_v45 = vld [vmem:[#allocation2 + $0x38] sm:$0xff]  ;;  %v345_v47 = vld [vmem:[#allocation2 + $0x40] sm:$0xff] }
  0x1e   :  { %719 = vmatprep.mubr.msk.f32.mxu0 %vm63_vm0, %v50_v16  ;;  %894 = vmatprep.subr.bf16.mxu0 %v893_v38  ;;  %v905_v46 = vpack.c.bf16 %v344_v45, %v343_v44  ;;  %v346_v48 = vld [vmem:[#allocation2 + $0x48] sm:$0xff]  ;;  %v347_v50 = vld [vmem:[#allocation2 + $0x50] sm:$0xff]  ;;  %v348_v51 = vld [vmem:[#allocation2 + $0x58] sm:$0xff] }
  0x1f   :  { %896 = vmatpush3.bf16.msra.mxu0 %v893_v38  ;;  %v909_v49 = vpack.c.bf16 %v346_v48, %v345_v47  ;;  %v913_v52 = vpack.c.bf16 %v348_v51, %v347_v50  ;;  %v349_v53 = vld [vmem:[#allocation2 + $0x60] sm:$0xff]  ;;  %v350_v54 = vld [vmem:[#allocation2 + $0x68] sm:$0xff]  ;;  %v351_v17 = vld [vmem:[#allocation2 + $0x70] sm:$0xff] }
  0x20   :  { %872 = vmatpush3.bf16.msra.mxu1 %v869_v15  ;;  %898 = vmatprep.subr.bf16.mxu0 %v897_v40  ;;  %v917_v55 = vpack.c.bf16 %v350_v54, %v349_v53  ;;  %v615_v56 = vld [vmem:[%s1245_s2] ss:$0 sm:$0xff]  ;;  %v352_v18 = vld [vmem:[#allocation2 + $0x78] sm:$0xff]  ;;  %v475_v22 = vld [vmem:[%s1250_s7 + $0x10] sm:$0xff] }
  0x21   :  { %720 = vmatmul.mubr.msk.f32.gmra.mrb[4].mxu0 %vm63_vm0, %v51_v19  ;;  %874 = vmatprep.subr.bf16.mxu1 %v873_v20  ;;  %v921_v19 = vpack.c.bf16 %v352_v18, %v351_v17  ;;  %v477_v26 = vld [vmem:[%s1250_s7 + $0x20] sm:$0xff]  ;;  %v478_v27 = vld [vmem:[%s1250_s7 + $0x28] sm:$0xff]  ;;  %v479_v29 = vld [vmem:[%s1250_s7 + $0x30] sm:$0xff] }
  0x22   :  { %722 = vmatprep.mubr.msk.f32.mxu0 %vm63_vm0, %v52_v21  ;;  %v474_v21 = vld [vmem:[%s1250_s7 + $0x8] sm:$0xff]  ;;  %v480_v30 = vld [vmem:[%s1250_s7 + $0x38] sm:$0xff]  ;;  %v481_v32 = vld [vmem:[%s1250_s7 + $0x40] sm:$0xff] }
  0x23   :  { %900 = vmatpush3.bf16.msra.mxu0 %v897_v40  ;;  %v482_v33 = vld [vmem:[%s1250_s7 + $0x48] sm:$0xff]  ;;  %v483_v35 = vld [vmem:[%s1250_s7 + $0x50] sm:$0xff]  ;;  %v484_v36 = vld [vmem:[%s1250_s7 + $0x58] sm:$0xff] }
  0x24   :  { %876 = vmatpush3.bf16.msra.mxu1 %v873_v20  ;;  %902 = vmatprep.subr.bf16.mxu0 %v901_v43  ;;  %v473_v20 = vld [vmem:[%s1250_s7] sm:$0xff]  ;;  %v945_v37 = vpack.c.bf16 %v484_v36, %v483_v35  ;;  %v486_v39 = vld [vmem:[%s1250_s7 + $0x68] sm:$0xff] }
  0x25   :  { %723 = vmatmul.mubr.msk.f32.gmra.mrb[6].mxu0 %vm63_vm0, %v53_v24  ;;  %878 = vmatprep.subr.bf16.mxu1 %v877_v25  ;;  %v925_v23 = vpack.c.bf16 %v474_v21, %v473_v20  ;;  %v476_v24 = vld [vmem:[%s1250_s7 + $0x18] sm:$0xff]  ;;  %v485_v38 = vld [vmem:[%s1250_s7 + $0x60] sm:$0xff] }
  0x26   :  { %v949_v40 = vpack.c.bf16 %v486_v39, %v485_v38  ;;  %v624_v41 = vld [vmem:[%s1247_s4] ss:$0 sm:$0xff] }
  0x27   :  { %904 = vmatpush3.bf16.msra.mxu0 %v901_v43 }
  0x28   :  { %880 = vmatpush3.bf16.msra.mxu1 %v877_v25  ;;  %906 = vmatprep.subr.bf16.mxu0 %v905_v46  ;;  %v929_v25 = vpack.c.bf16 %v476_v24, %v475_v22 }
  0x29   :  { %882 = vmatprep.subr.bf16.mxu1 %v881_v28 }
  0x2b   :  { %908 = vmatpush3.bf16.msra.mxu0 %v905_v46 }
  0x2c   :  { %884 = vmatpush3.bf16.msra.mxu1 %v881_v28  ;;  %910 = vmatprep.subr.bf16.mxu0 %v909_v49  ;;  %v933_v28 = vpack.c.bf16 %v478_v27, %v477_v26 }
  0x2d   :  { %886 = vmatprep.subr.bf16.mxu1 %v885_v31 }
  0x2f   :  { %912 = vmatpush3.bf16.msra.mxu0 %v909_v49 }
  0x30   :  { %888 = vmatpush3.bf16.msra.mxu1 %v885_v31  ;;  %914 = vmatprep.subr.bf16.mxu0 %v913_v52  ;;  %v937_v31 = vpack.c.bf16 %v480_v30, %v479_v29  ;;  %v626_v30 = vld [vmem:[%s1251_s8] ss:$0 sm:$0xff] }
  0x31   :  { %890 = vmatprep.subr.bf16.mxu1 %v889_v34 }
  0x33   :  { %916 = vmatpush3.bf16.msra.mxu0 %v913_v52 }
  0x34   :  { %892 = vmatpush3.bf16.msra.mxu1 %v889_v34  ;;  %918 = vmatprep.subr.bf16.mxu0 %v917_v55  ;;  %v941_v34 = vpack.c.bf16 %v482_v33, %v481_v32 }
  0x35   :  { %957 = vmatprep.subr.bf16.mxu1 %v925_v23 }
  0x37   :  { %920 = vmatpush3.bf16.msra.mxu0 %v917_v55 }
  0x38   :  { %922 = vmatprep.subr.bf16.mxu0 %v921_v19 }
  0x3b   :  { %924 = vmatpush3.bf16.msra.mxu0 %v921_v19 }
  0x3c   :  { %926 = vmatprep.subr.bf16.mxu0 %v925_v23 }
  0xec   :  { %v715_v57 = vpop.f32.mrb[0].mxu0 }
  0xed   :  { %v160_v58 = vadd.f32 %v715_v57, %v615_v56  ;;  %v154_v59 = vpop.f32.mrb[1].mxu0 }
  0xee   :  { %v155_v60 = vadd.f32 %v615_v56, %v154_v59 }
  0xef   :  { %v194_v63 = vmax.f32 %v160_v58, 0.0 }
  0xf0   :  { %v718_v61 = vpop.f32.mrb[2].mxu0  ;;  %v193_v62 = vmax.f32 %v155_v60, 0.0 }
  0xf1   :  { %v170_v0 = vadd.f32 %v718_v61, %v615_v56  ;;  %v164_v1 = vpop.f32.mrb[3].mxu0 }
  0xf2   :  { %v165_v2 = vadd.f32 %v615_v56, %v164_v1  ;;  %757 = vmatprep.mubr.f32.mxu1 %v193_v62 }
  0xf3   :  { %758 = vmatmul.mubr.f32.vlgmr.msra.gmra.mrb[0].mxu1 %v194_v63  ;;  %v196_v5 = vmax.f32 %v170_v0, 0.0 }
  0xf4   :  { %v195_v3 = vmax.f32 %v165_v2, 0.0  ;;  %v721_v4 = vpop.f32.mrb[4].mxu0  ;;  %965 = vmatpush3.bf16.msra.mxu1 %v925_v23  ;;  %v487_v2 = vld [vmem:[%s1250_s7 + $0x70] sm:$0xff] }
  0xf5   :  { %v180_v6 = vadd.f32 %v721_v4, %v615_v56  ;;  %v174_v7 = vpop.f32.mrb[5].mxu0  ;;  %958 = vmatprep.subr.bf16.mxu1 %v929_v25 }
  0xf6   :  { %v175_v8 = vadd.f32 %v615_v56, %v174_v7  ;;  %760 = vmatprep.mubr.f32.mxu1 %v195_v3  ;;  %v488_v3 = vld [vmem:[%s1250_s7 + $0x78] sm:$0xff] }
  0xf7   :  { %761 = vmatmul.mubr.f32.gmra.mrb[2].mxu1 %v196_v5  ;;  %v198_v11 = vmax.f32 %v180_v6, 0.0  ;;  %v953_v4 = vpack.c.bf16 %v488_v3, %v487_v2  ;;  %v625_v5 = vld [vmem:[%s1249_s6] ss:$0 sm:$0xff] }
  0xf8   :  { %v197_v9 = vmax.f32 %v175_v8, 0.0  ;;  %v724_v10 = vpop.f32.mrb[6].mxu0  ;;  %966 = vmatpush3.bf16.msra.mxu1 %v929_v25 }
  0xf9   :  { %v190_v12 = vadd.f32 %v724_v10, %v615_v56  ;;  %v184_v13 = vpop.f32.mrb[7].mxu0  ;;  %959 = vmatprep.subr.bf16.mxu1 %v933_v28 }
  0xfa   :  { %v185_v14 = vadd.f32 %v615_v56, %v184_v13  ;;  %763 = vmatprep.mubr.f32.mxu1 %v197_v9 }
  0xfb   :  { %764 = vmatmul.mubr.f32.gmra.mrb[4].mxu1 %v198_v11  ;;  %v200_v16 = vmax.f32 %v190_v12, 0.0 }
  0xfc   :  { %v199_v15 = vmax.f32 %v185_v14, 0.0  ;;  %967 = vmatpush3.bf16.msra.mxu1 %v933_v28 }
  0xfd   :  { %960 = vmatprep.subr.bf16.mxu1 %v937_v31 }
  0xfe   :  { %766 = vmatprep.mubr.f32.mxu1 %v199_v15 }
  0xff   :  { %767 = vmatmul.mubr.f32.gmra.mrb[6].mxu1 %v200_v16 }
 0x100   :  { %968 = vmatpush3.bf16.msra.mxu1 %v937_v31 }
 0x101   :  { %961 = vmatprep.subr.bf16.mxu1 %v941_v34 }
 0x104   :  { %969 = vmatpush3.bf16.msra.mxu1 %v941_v34 }
 0x105   :  { %962 = vmatprep.subr.bf16.mxu1 %v945_v37 }
 0x108   :  { %970 = vmatpush3.bf16.msra.mxu1 %v945_v37 }
 0x109   :  { %963 = vmatprep.subr.bf16.mxu1 %v949_v40 }
 0x10c   :  { %971 = vmatpush3.bf16.msra.mxu1 %v949_v40 }
 0x10d   :  { %964 = vmatprep.subr.bf16.mxu1 %v953_v4 }
 0x110   :  { %972 = vmatpush3.bf16.msra.mxu1 %v953_v4 }
 0x1c6   :  { %v759_v42 = vpop.f32.mrb[0].mxu1 }
 0x1c7   :  { %v296_v43 = vadd.f32 %v759_v42, %v624_v41  ;;  %v290_v44 = vpop.f32.mrb[1].mxu1 }
 0x1c8   :  { %v291_v45 = vadd.f32 %v624_v41, %v290_v44 }
 0x1c9   :  { %v330_v48 = vmax.f32 %v296_v43, 0.0 }
 0x1ca   :  { %v329_v46 = vmax.f32 %v291_v45, 0.0  ;;  %v762_v47 = vpop.f32.mrb[2].mxu1 }
 0x1cb   :  { %v306_v49 = vadd.f32 %v762_v47, %v624_v41  ;;  %v300_v50 = vpop.f32.mrb[3].mxu1 }
 0x1cc   :  { %v301_v51 = vadd.f32 %v624_v41, %v300_v50  ;;  %801 = vmatprep.mubr.f32.mxu0 %v329_v46 }
 0x1cd   :  { %802 = vmatmul.mubr.f32.vlgmr.msra.gmra.mrb[8].mxu0 %v330_v48  ;;  %v332_v54 = vmax.f32 %v306_v49, 0.0 }
 0x1ce   :  { %v331_v52 = vmax.f32 %v301_v51, 0.0  ;;  %v765_v53 = vpop.f32.mrb[4].mxu1  ;;  %928 = vmatpush3.bf16.msra.mxu0 %v925_v23 }
 0x1cf   :  { %v316_v55 = vadd.f32 %v765_v53, %v624_v41  ;;  %v310_v56 = vpop.f32.mrb[5].mxu1  ;;  %930 = vmatprep.subr.bf16.mxu0 %v929_v25 }
 0x1d0   :  { %v311_v57 = vadd.f32 %v624_v41, %v310_v56  ;;  %804 = vmatprep.mubr.f32.mxu0 %v331_v52 }
 0x1d1   :  { %805 = vmatmul.mubr.f32.gmra.mrb[10].mxu0 %v332_v54  ;;  %v334_v60 = vmax.f32 %v316_v55, 0.0 }
 0x1d2   :  { %v333_v58 = vmax.f32 %v311_v57, 0.0  ;;  %v768_v59 = vpop.f32.mrb[6].mxu1  ;;  %932 = vmatpush3.bf16.msra.mxu0 %v929_v25 }
 0x1d3   :  { %v326_v61 = vadd.f32 %v768_v59, %v624_v41  ;;  %v320_v62 = vpop.f32.mrb[7].mxu1  ;;  %934 = vmatprep.subr.bf16.mxu0 %v933_v28 }
 0x1d4   :  { %v321_v63 = vadd.f32 %v624_v41, %v320_v62  ;;  %807 = vmatprep.mubr.f32.mxu0 %v333_v58 }
 0x1d5   :  { %808 = vmatmul.mubr.f32.gmra.mrb[12].mxu0 %v334_v60  ;;  %v336_v1 = vmax.f32 %v326_v61, 0.0 }
 0x1d6   :  { %v335_v0 = vmax.f32 %v321_v63, 0.0  ;;  %936 = vmatpush3.bf16.msra.mxu0 %v933_v28 }
 0x1d7   :  { %938 = vmatprep.subr.bf16.mxu0 %v937_v31 }
 0x1d8   :  { %810 = vmatprep.mubr.f32.mxu0 %v335_v0 }
 0x1d9   :  { %811 = vmatmul.mubr.f32.gmra.mrb[14].mxu0 %v336_v1 }
 0x1da   :  { %940 = vmatpush3.bf16.msra.mxu0 %v937_v31 }
 0x1db   :  { %942 = vmatprep.subr.bf16.mxu0 %v941_v34 }
 0x1de   :  { %944 = vmatpush3.bf16.msra.mxu0 %v941_v34 }
 0x1df   :  { %946 = vmatprep.subr.bf16.mxu0 %v945_v37 }
 0x1e2   :  { %948 = vmatpush3.bf16.msra.mxu0 %v945_v37 }
 0x1e3   :  { %950 = vmatprep.subr.bf16.mxu0 %v949_v40 }
 0x1e6   :  { %952 = vmatpush3.bf16.msra.mxu0 %v949_v40 }
 0x1e7   :  { %954 = vmatprep.subr.bf16.mxu0 %v953_v4 }
 0x1ea   :  { %956 = vmatpush3.bf16.msra.mxu0 %v953_v4 }
 0x2a0   :  { %v803_v6 = vpop.f32.mrb[8].mxu0 }
 0x2a1   :  { %v432_v7 = vadd.f32 %v803_v6, %v625_v5  ;;  %v426_v8 = vpop.f32.mrb[9].mxu0 }
 0x2a2   :  { %v427_v9 = vadd.f32 %v625_v5, %v426_v8 }
 0x2a3   :  { %v466_v12 = vmax.f32 %v432_v7, 0.0 }
 0x2a4   :  { %v465_v10 = vmax.f32 %v427_v9, 0.0  ;;  %v806_v11 = vpop.f32.mrb[10].mxu0 }
 0x2a5   :  { %v442_v13 = vadd.f32 %v806_v11, %v625_v5  ;;  %v436_v14 = vpop.f32.mrb[11].mxu0 }
 0x2a6   :  { %v437_v15 = vadd.f32 %v625_v5, %v436_v14  ;;  %845 = vmatprep.mubr.f32.mxu0 %v465_v10 }
 0x2a7   :  { %846 = vmatmul.mubr.f32.vlgmr.msra.gmra.mrb[16].mxu0 %v466_v12  ;;  %v468_v18 = vmax.f32 %v442_v13, 0.0 }
 0x2a8   :  { %v467_v16 = vmax.f32 %v437_v15, 0.0  ;;  %v809_v17 = vpop.f32.mrb[12].mxu0 }
 0x2a9   :  { %v452_v19 = vadd.f32 %v809_v17, %v625_v5  ;;  %v446_v20 = vpop.f32.mrb[13].mxu0 }
 0x2aa   :  { %v447_v21 = vadd.f32 %v625_v5, %v446_v20  ;;  %848 = vmatprep.mubr.f32.mxu1 %v467_v16 }
 0x2ab   :  { %849 = vmatmul.mubr.f32.vlgmr.msra.gmra.mrb[8].mxu1 %v468_v18  ;;  %v470_v24 = vmax.f32 %v452_v19, 0.0 }
 0x2ac   :  { %v469_v22 = vmax.f32 %v447_v21, 0.0  ;;  %v812_v23 = vpop.f32.mrb[14].mxu0 }
 0x2ad   :  { %v462_v25 = vadd.f32 %v812_v23, %v625_v5  ;;  %v456_v26 = vpop.f32.mrb[15].mxu0 }
 0x2ae   :  { %v457_v27 = vadd.f32 %v625_v5, %v456_v26  ;;  %851 = vmatprep.mubr.f32.mxu1 %v469_v22 }
 0x2af   :  { %852 = vmatmul.mubr.f32.gmra.mrb[10].mxu1 %v470_v24  ;;  %v472_v29 = vmax.f32 %v462_v25, 0.0 }
 0x2b0   :  { %v471_v28 = vmax.f32 %v457_v27, 0.0 }
 0x2b2   :  { %854 = vmatprep.mubr.f32.mxu1 %v471_v28 }
 0x2b3   :  { %855 = vmatmul.mubr.f32.gmra.mrb[12].mxu1 %v472_v29 }
 0x37a   :  { %v847_v31 = vpop.f32.mrb[16].mxu0 }
 0x37b   :  { %v568_v32 = vadd.f32 %v847_v31, %v626_v30  ;;  %v562_v33 = vpop.f32.mrb[17].mxu0 }
 0x37c   :  { %v563_v34 = vadd.f32 %v626_v30, %v562_v33 }
 0x37d   :  { %603 = vst.msk [vmem:[%s1252_s9 + $0x8] sm:$0xff] %vm601_vm1, %v568_v32 }
 0x37e   :  { %602 = vst.msk [vmem:[%s1252_s9] sm:$0xff] %vm601_vm1, %v563_v34  ;;  %v850_v35 = vpop.f32.mrb[8].mxu1 }
 0x37f   :  { %v578_v36 = vadd.f32 %v850_v35, %v626_v30  ;;  %v572_v37 = vpop.f32.mrb[9].mxu1 }
 0x380   :  { %v573_v38 = vadd.f32 %v626_v30, %v572_v37 }
 0x381   :  { %605 = vst.msk [vmem:[%s1252_s9 + $0x18] sm:$0xff] %vm601_vm1, %v578_v36 }
 0x382   :  { %604 = vst.msk [vmem:[%s1252_s9 + $0x10] sm:$0xff] %vm601_vm1, %v573_v38  ;;  %v853_v39 = vpop.f32.mrb[10].mxu1 }
 0x383   :  { %v588_v40 = vadd.f32 %v853_v39, %v626_v30  ;;  %v582_v41 = vpop.f32.mrb[11].mxu1 }
 0x384   :  { %v583_v42 = vadd.f32 %v626_v30, %v582_v41 }
 0x385   :  { %607 = vst.msk [vmem:[%s1252_s9 + $0x28] sm:$0xff] %vm601_vm1, %v588_v40 }
 0x386   :  { %606 = vst.msk [vmem:[%s1252_s9 + $0x20] sm:$0xff] %vm601_vm1, %v583_v42  ;;  %v856_v43 = vpop.f32.mrb[12].mxu1 }
 0x387   :  { %v598_v44 = vadd.f32 %v856_v43, %v626_v30  ;;  %v592_v45 = vpop.f32.mrb[13].mxu1 }
 0x388   :  { %v593_v46 = vadd.f32 %v626_v30, %v592_v45 }
 0x389   :  { %609 = vst.msk [vmem:[%s1252_s9 + $0x38] sm:$0xff] %vm601_vm1, %v598_v44 }
 0x38a   :  { %608 = vst.msk [vmem:[%s1252_s9 + $0x30] sm:$0xff] %vm601_vm1, %v593_v46 }
 0x38b   :  { %614 = vsyncpa [#allocation3], 1 }

</bundles_post_ra>
